<compile_context>
chip_gen: v7x
topology: tpu7x:2x2x1
jax: 0.10.0
libtpu: 0.0.40
codegen_flags: <defaults>
</compile_context>

<pallas_src>
import jax
import jax.numpy as jnp
from jax.experimental import pallas as pl
from jax.experimental.pallas import tpu as pltpu

IN_FEATURES = 10 * 4          # 40
HIDDEN = 385 * 4 * 4          # 6160
N_ACTIONS = 385


# ---------------- kernel ----------------

def _dqn_kernel(x_ref, w_ref, b_ref, o_ref):
    # y = x @ W_eff + b_eff   (single small GEMM, f32 accumulation on the MXU)
    o_ref[...] = (
        jnp.dot(x_ref[...], w_ref[...], preferred_element_type=jnp.float32)
        + b_ref[...]
    )


# ---------------- parameter prep (one-time, outside the hot path) ----------------

def prepare_params(params):
    """Fold the two activation-less Linears into one effective layer.

    Reads the 152 MB W2 exactly once (at prep time); afterwards every forward
    only touches ~1 MB of weights.
    """
    w1 = params["w1"]
    w2 = params["w2"]
    b1 = params["b1"].reshape(1, HIDDEN)
    b2 = params["b2"].reshape(1, HIDDEN)
    w_eff = jnp.dot(w1, w2, preferred_element_type=jnp.float32)        # (40, 6160)
    b_eff = jnp.dot(b1, w2, preferred_element_type=jnp.float32) + b2   # (1, 6160)
    return {"w_eff": w_eff, "b_eff": b_eff}


# ---------------- wrapper ----------------

def dqn_forward(states, fused_params):
    """Pallas equivalent of DQN.forward (with W1/W2 pre-folded)."""
    x = states.reshape(-1, IN_FEATURES)               # states.view(-1, 40)
    B = x.shape[0]
    w_eff = fused_params["w_eff"]
    b_eff = fused_params["b_eff"].reshape(1, HIDDEN)

    cost = pl.CostEstimate(
        flops=2 * B * IN_FEATURES * HIDDEN,
        transcendentals=0,
        bytes_accessed=4 * (B * IN_FEATURES
                            + IN_FEATURES * HIDDEN
                            + HIDDEN
                            + B * HIDDEN),
    )

    y = pl.pallas_call(
        _dqn_kernel,
        out_shape=jax.ShapeDtypeStruct((B, HIDDEN), jnp.float32),
        grid_spec=pltpu.PrefetchScalarGridSpec(
            num_scalar_prefetch=0,
            grid=(1,),
            in_specs=[
                # Full-array blocks: everything (~1.1 MB) resident in VMEM.
                pl.BlockSpec((B, IN_FEATURES), lambda i: (0, 0)),
                pl.BlockSpec((IN_FEATURES, HIDDEN), lambda i: (0, 0)),
                pl.BlockSpec((1, HIDDEN), lambda i: (0, 0)),
            ],
            out_specs=pl.BlockSpec((B, HIDDEN), lambda i: (0, 0)),
        ),
        compiler_params=pltpu.CompilerParams(
            dimension_semantics=("arbitrary",),
            vmem_limit_bytes=32 * 1024 * 1024,
        ),
        cost_estimate=cost,
    )(x, w_eff, b_eff)

    return y.reshape(-1, N_ACTIONS, 4, 4)             # reshape([-1, 385, 4, 4])


def init_params(key):
    # Deterministic init mimicking PyTorch's default U(-1/sqrt(fan_in), +1/sqrt(fan_in)).
    k1, k2, k3, k4 = jax.random.split(key, 4)
    s1 = 1.0 / jnp.sqrt(IN_FEATURES)
    s2 = 1.0 / jnp.sqrt(HIDDEN)
    return {
        "w1": jax.random.uniform(k1, (IN_FEATURES, HIDDEN), jnp.float32, -s1, s1),
        "b1": jax.random.uniform(k2, (HIDDEN,), jnp.float32, -s1, s1),
        "w2": jax.random.uniform(k3, (HIDDEN, HIDDEN), jnp.float32, -s2, s2),
        "b2": jax.random.uniform(k4, (HIDDEN,), jnp.float32, -s2, s2),
    }


if __name__ == "__main__":
    key = jax.random.PRNGKey(0)
    pkey, xkey = jax.random.split(key)
    params = init_params(pkey)

    # One-time fold of the two Linears (weights are static).
    fused = jax.block_until_ready(prepare_params(params))

    # states: batch of 2 "board states" of shape (10, 4) -> viewed as (-1, 40).
    states = jax.random.normal(xkey, (2, 10, 4), dtype=jnp.float32)

    out = dqn_forward(states, fused)
    out = jax.block_until_ready(out)
    assert out.shape == (2, N_ACTIONS, 4, 4), out.shape

    # Pure-JAX reference check against the ORIGINAL two-layer computation.
    x = states.reshape(-1, IN_FEATURES)
    ref = (x @ params["w1"] + params["b1"]) @ params["w2"] + params["b2"]
    ref = ref.reshape(-1, N_ACTIONS, 4, 4)
    assert jnp.allclose(out, ref, atol=5e-3, rtol=5e-3)

    print("KERNEL_OK")
</pallas_src>

<mosaic_0001>
module attributes {stable_mosaic.version = 11 : i64} {
  func.func @_dqn_kernel(%arg0: i32, %arg1: memref<2x40xf32, #tpu.memory_space<vmem>>, %arg2: memref<40x6160xf32, #tpu.memory_space<vmem>>, %arg3: memref<1x6160xf32, #tpu.memory_space<vmem>>, %arg4: memref<2x6160xf32, #tpu.memory_space<vmem>>) attributes {dimension_semantics = [#tpu.dimension_semantics<arbitrary>], iteration_bounds = array<i64: 1>, scalar_prefetch = 0 : i64, scratch_operands = 0 : i64, tpu.core_type = #tpu.core_type<tc>, window_params = [{pipeline_mode = #tpu.pipeline_mode<synchronous>, transform_indices = @transform_0, window_bounds = array<i64: 2, 40>}, {pipeline_mode = #tpu.pipeline_mode<synchronous>, transform_indices = @transform_1, window_bounds = array<i64: 40, 6160>}, {pipeline_mode = #tpu.pipeline_mode<synchronous>, transform_indices = @transform_2, window_bounds = array<i64: 1, 6160>}, {pipeline_mode = #tpu.pipeline_mode<synchronous>, transform_indices = @transform_3, window_bounds = array<i64: 2, 6160>}]} {
    %c0 = arith.constant 0 : index
    %c0_0 = arith.constant 0 : index
    %0 = vector.load %arg1[%c0, %c0_0] : memref<2x40xf32, #tpu.memory_space<vmem>>, vector<2x40xf32>
    %c0_1 = arith.constant 0 : index
    %c0_2 = arith.constant 0 : index
    %1 = vector.load %arg2[%c0_1, %c0_2] : memref<40x6160xf32, #tpu.memory_space<vmem>>, vector<40x6160xf32>
    %cst = arith.constant dense<0.000000e+00> : vector<2x6160xf32>
    %2 = tpu.matmul %0, %1, %cst {dimension_numbers = #tpu.dot_dimension_numbers<[1], [0], [0], [1], [0, 0, 1, 1], [], []>} : vector<2x40xf32>, vector<40x6160xf32>, vector<2x6160xf32> -> vector<2x6160xf32>
    %c0_3 = arith.constant 0 : index
    %c0_4 = arith.constant 0 : index
    %3 = vector.load %arg3[%c0_3, %c0_4] : memref<1x6160xf32, #tpu.memory_space<vmem>>, vector<1x6160xf32>
    %4 = vector.broadcast %3 : vector<1x6160xf32> to vector<2x6160xf32>
    %5 = arith.addf %2, %4 : vector<2x6160xf32>
    %c0_5 = arith.constant 0 : index
    %c0_6 = arith.constant 0 : index
    %6 = vector.load %arg4[%c0_5, %c0_6] : memref<2x6160xf32, #tpu.memory_space<vmem>>, vector<2x6160xf32>
    tpu.vector_store %arg4[%c0_5, %c0_6], %5 {strides = array<i32>} : memref<2x6160xf32, #tpu.memory_space<vmem>>, vector<2x6160xf32>,
    return
  }
  func.func @transform_0(%arg0: i32) -> (i32, i32) {
    %c0_i32 = arith.constant 0 : i32
    %c0_i32_0 = arith.constant 0 : i32
    %c0_i32_1 = arith.constant 0 : i32
    return %c0_i32, %c0_i32_0 : i32, i32
  }
  func.func @transform_1(%arg0: i32) -> (i32, i32) {
    %c0_i32 = arith.constant 0 : i32
    %c0_i32_0 = arith.constant 0 : i32
    %c0_i32_1 = arith.constant 0 : i32
    return %c0_i32, %c0_i32_0 : i32, i32
  }
  func.func @transform_2(%arg0: i32) -> (i32, i32) {
    %c0_i32 = arith.constant 0 : i32
    %c0_i32_0 = arith.constant 0 : i32
    %c0_i32_1 = arith.constant 0 : i32
    return %c0_i32, %c0_i32_0 : i32, i32
  }
  func.func @transform_3(%arg0: i32) -> (i32, i32) {
    %c0_i32 = arith.constant 0 : i32
    %c0_i32_0 = arith.constant 0 : i32
    %c0_i32_1 = arith.constant 0 : i32
    return %c0_i32, %c0_i32_0 : i32, i32
  }
}

</mosaic_0001>

<bundles_post_ra>
// kernel: tpu_custom_call.1
= control target key start
LH: loop header
LB: loop body
LE: loop exit
PB: predicated region body
PF: predicated region fallthrough
CT: control target
= control target key end

     0   :  { %8 = vsyncpa [#allocation3], 0  ;;  %s3232_s0 = inlined_call_operand.hbm [shape: f32[2,40], index: 0, kind: input, shape index: {}]   ;;  %s3233_s1 = inlined_call_operand.hbm [shape: f32[40,6160], index: 1, kind: input, shape index: {}]   ;;  %s3234_s2 = inlined_call_operand.hbm [shape: f32[1,6160], index: 2, kind: input, shape index: {}]   ;;  %s3235_s3 = inlined_call_operand.hbm [shape: f32[2,6160], index: 3, kind: output, shape index: {}]  }
   0x1   :  { %9 = vsyncpa [#allocation6], 0 }
   0x2   :  { %10 = vsyncpa [#allocation4], 0  ;;  %s2985_s12 = smov [#allocation5]   ;;  %s2891_s16 = scalar_lea.hbm %s3233_s1, 31360 }
   0x3   :  { %s26_s13 = sshll.u32 %s2985_s12, 4  ;;  %p2892_p0 = scmp.ne.s32.totalorder %s3233_s1, %s2891_s16  ;;  %s27_s13 = int_to_ptr.vmem [resolvable:$true] %s26_s13 }
   0x4   :  { %p2895_p1 = scmp.lt.u32.totalorder %s2891_s16, %s3233_s1 }
   0x6   :  { %p2897_p2 = pnand %p2895_p1, %p2892_p0 }
   0x8   :  { %2900 = shalt.err (!%p2897_p2)
}
   0x9   :  { %s2901_s21 = scalar_lea.vmem %s27_s13, 31360  ;;  %p2906_p4 = scmp.lt.s32.totalorder %s27_s13, %s27_s13 }
   0xa   :  { %p2902_p3 = scmp.ne.s32.totalorder %s27_s13, %s2901_s21  ;;  %p2907_p5 = scmp.lt.s32.totalorder %s2901_s21, %s2901_s21 }
   0xc   :  { %p2908_p6 = por %p2907_p5, %p2906_p4 }
   0xe   :  { %p2909_p7 = pnand %p2908_p6, %p2902_p3 }
  0x10   :  { %2912 = shalt.err (!%p2909_p7)
}
  0x11   :  { %s2986_s22 = smov 6272   ;;  %s2987_s23 = smov 392  }
  0x12   :  { %32 = dma.hbm_to_vmem [thread:$0]  %s3233_s1, 31360, %s27_s13, [#allocation6], %s2986_s22, %s2986_s22, %s2987_s23  }
  0x13   :  { %s2988_s26 = smov [#allocation2]   ;;  %s2989_s28 = smov [#allocation7]  }
  0x14   :  { %s17_s27 = sshll.u32 %s2988_s26, 4  ;;  %s39_s29 = sshll.u32 %s2989_s28, 4  ;;  %s18_s27 = int_to_ptr.vmem [resolvable:$true] %s17_s27  ;;  %s40_s29 = int_to_ptr.vmem [resolvable:$true] %s39_s29 }
  0x15   :  { %s2913_s5 = scalar_lea.hbm %s3232_s0, 32 }
  0x16   :  { %p2914_p8 = scmp.ne.s32.totalorder %s3232_s0, %s2913_s5  ;;  %p2917_p9 = scmp.lt.u32.totalorder %s2913_s5, %s3232_s0 }
  0x18   :  { %p2919_p10 = pnand %p2917_p9, %p2914_p8 }
  0x1a   :  { %2922 = shalt.err (!%p2919_p10)
}
  0x1b   :  { %s2923_s1 = scalar_lea.vmem %s18_s27, 32  ;;  %p2928_p12 = scmp.lt.s32.totalorder %s18_s27, %s18_s27 }
  0x1c   :  { %p2924_p11 = scmp.ne.s32.totalorder %s18_s27, %s2923_s1  ;;  %p2929_p13 = scmp.lt.s32.totalorder %s2923_s1, %s2923_s1 }
  0x1e   :  { %p2930_p0 = por %p2929_p13, %p2928_p12 }
  0x20   :  { %p2931_p1 = pnand %p2930_p0, %p2924_p11 }
  0x22   :  { %2934 = shalt.err (!%p2931_p1)
}
  0x23   :  { %20 = dma.hbm_to_vmem [thread:$0]  %s3232_s0, 32, %s18_s27, [#allocation3]  }
  0x24   :  { %s2935_s14 = scalar_lea.hbm %s3234_s2, 784 }
  0x25   :  { %p2936_p2 = scmp.ne.s32.totalorder %s3234_s2, %s2935_s14  ;;  %p2939_p3 = scmp.lt.u32.totalorder %s2935_s14, %s3234_s2 }
  0x27   :  { %p2941_p4 = pnand %p2939_p3, %p2936_p2 }
  0x29   :  { %2944 = shalt.err (!%p2941_p4)
}
  0x2a   :  { %s2945_s19 = scalar_lea.vmem %s40_s29, 784  ;;  %s2949_s20 = scalar_lea.vmem %s40_s29, 800 }
  0x2b   :  { %p2946_p5 = scmp.ne.s32.totalorder %s40_s29, %s2945_s19  ;;  %p2950_p6 = scmp.lt.s32.totalorder %s40_s29, %s40_s29 }
  0x2c   :  { %p2951_p7 = scmp.lt.s32.totalorder %s2949_s20, %s2945_s19 }
  0x2e   :  { %p2952_p8 = por %p2951_p7, %p2950_p6 }
  0x30   :  { %p2953_p9 = pnand %p2952_p8, %p2946_p5 }
  0x32   :  { %2956 = shalt.err (!%p2953_p9)
}
  0x33   :  { %42 = dma.hbm_to_vmem [thread:$0]  %s3234_s2, 784, %s40_s29, [#allocation6]  }
  0x34   :  { %2979 = dma.done.wait [#allocation3], 32  }
  0x35   :  { %2980 = vsyncadd [#allocation3], 4294967264 }
  0x36   :  { %2981 = dma.done.wait [#allocation6], 32144  }
  0x37   :  { %2982 = vsyncadd [#allocation6], 4294935152  ;;  %v2990_v0 = vmov 0.0   ;;  %v54_v1 = vld [vmem:[#allocation5 + $0x8] sm:$0xff]  ;;  %v103_v2 = vld [vmem:[#allocation5 + $0x190] sm:$0xff]  ;;  %vm557_vm0 = vcmask 326656  }
  0x38   :  { %625 = vmatprep.mubr.f32.mxu0 %v2990_v0  ;;  %696 = vmatprep.mubr.f32.mxu1 %v2990_v0  ;;  %v56_v3 = vld [vmem:[#allocation5 + $0x18] sm:$0xff]  ;;  %v2683_v4 = vpack.c.bf16 %v103_v2, %v54_v1  ;;  %v105_v5 = vld [vmem:[#allocation5 + $0x1a0] sm:$0xff]  ;;  %v102_v7 = vld [vmem:[#allocation5 + $0x188] sm:$0xff]  ;;  %vm2992_vm1 = vmmov 0   ;;  %s2994_s2 = smov [#allocation8]   ;;  %vm2620_vm2 = vcmask 123904  }
  0x39   :  { %v53_v6 = vld [vmem:[#allocation5] sm:$0xff]  ;;  %v2691_v8 = vpack.c.bf16 %v105_v5, %v56_v3  ;;  %v55_v10 = vld [vmem:[#allocation5 + $0x10] sm:$0xff]  ;;  %v104_v11 = vld [vmem:[#allocation5 + $0x198] sm:$0xff]  ;;  %s2628_s22 = sshll.u32 %s2994_s2, 4  ;;  %s2629_s22 = int_to_ptr.vmem [resolvable:$true] %s2628_s22 }
  0x3a   :  { %v2685_v9 = vpack.c.bf16 %v102_v7, %v53_v6  ;;  %v152_v12 = vld [vmem:[#allocation5 + $0x318] sm:$0xff]  ;;  %2684 = vmatprep.subr.bf16.mxu0 %v2683_v4  ;;  %v2693_v13 = vpack.c.bf16 %v104_v11, %v55_v10  ;;  %v201_v14 = vld [vmem:[#allocation5 + $0x4a0] sm:$0xff]  ;;  %v154_v15 = vld [vmem:[#allocation5 + $0x328] sm:$0xff]  ;;  %s2957_s23 = scalar_lea.vmem %s2629_s22, 1568  ;;  %p2962_p11 = scmp.lt.s32.totalorder %s2629_s22, %s2629_s22 }
  0x3b   :  { %v203_v16 = vld [vmem:[#allocation5 + $0x4b0] sm:$0xff]  ;;  %2692 = vmatprep.subr.bf16.mxu1 %v2691_v8  ;;  %v2687_v17 = vpack.c.bf16 %v201_v14, %v152_v12  ;;  %v200_v20 = vld [vmem:[#allocation5 + $0x498] sm:$0xff]  ;;  %v153_v21 = vld [vmem:[#allocation5 + $0x320] sm:$0xff]  ;;  %p2958_p10 = scmp.ne.s32.totalorder %s2629_s22, %s2957_s23  ;;  %p2963_p12 = scmp.lt.s32.totalorder %s2957_s23, %s2957_s23 }
  0x3c   :  { %2686 = vmatpush1.bf16.msra.mxu0 %v2685_v9  ;;  %v2695_v18 = vpack.c.bf16 %v203_v16, %v154_v15  ;;  %v151_v19 = vld [vmem:[#allocation5 + $0x310] sm:$0xff]  ;;  %2694 = vmatpush1.bf16.msra.mxu1 %v2693_v13  ;;  %v202_v23 = vld [vmem:[#allocation5 + $0x4a8] sm:$0xff]  ;;  %v252_v26 = vld [vmem:[#allocation5 + $0x638] sm:$0xff] }
  0x3d   :  { %v2689_v22 = vpack.c.bf16 %v200_v20, %v151_v19  ;;  %2688 = vmatprep.subr.bf16.mxu0 %v2687_v17  ;;  %v2697_v24 = vpack.c.bf16 %v202_v23, %v153_v21  ;;  %v250_v25 = vld [vmem:[#allocation5 + $0x628] sm:$0xff]  ;;  %v249_v27 = vld [vmem:[#allocation5 + $0x620] sm:$0xff]  ;;  %v107_v29 = vld [vmem:[#allocation5 + $0x1b0] sm:$0xff]  ;;  %p2964_p13 = por %p2963_p12, %p2962_p11 }
  0x3e   :  { %2696 = vmatprep.subr.bf16.mxu1 %v2695_v18  ;;  %v58_v28 = vld [vmem:[#allocation5 + $0x28] sm:$0xff]  ;;  %v60_v30 = vld [vmem:[#allocation5 + $0x38] sm:$0xff]  ;;  %v251_v31 = vld [vmem:[#allocation5 + $0x630] sm:$0xff] }
  0x3f   :  { %v3053_v32 = vld [vmem:[#allocation2] sm:$0x3]  ;;  %v109_v33 = vld [vmem:[#allocation5 + $0x1c0] sm:$0xff]  ;;  %v106_v35 = vld [vmem:[#allocation5 + $0x1a8] sm:$0xff]  ;;  %v2699_v39 = vpack.c.bf16 %v107_v29, %v58_v28  ;;  %p2965_p0 = pnand %p2964_p13, %p2958_p10 }
  0x40   :  { %2690 = vmatpush1.bf16.msra.mxu0 %v2689_v22  ;;  %v57_v34 = vld [vmem:[#allocation5 + $0x20] sm:$0xff]  ;;  %2698 = vmatpush1.bf16.msra.mxu1 %v2697_v24  ;;  %v59_v36 = vld [vmem:[#allocation5 + $0x30] sm:$0xff]  ;;  %v108_v37 = vld [vmem:[#allocation5 + $0x1b8] sm:$0xff]  ;;  %v2707_v43 = vpack.c.bf16 %v109_v33, %v60_v30 }
  0x41   :  { %569 = vmatprep.subr.mxu0 %v250_v25  ;;  %v156_v38 = vld [vmem:[#allocation5 + $0x338] sm:$0xff]  ;;  %640 = vmatprep.subr.mxu1 %v252_v26  ;;  %v205_v40 = vld [vmem:[#allocation5 + $0x4c0] sm:$0xff]  ;;  %v158_v41 = vld [vmem:[#allocation5 + $0x348] sm:$0xff]  ;;  %v2701_v44 = vpack.c.bf16 %v106_v35, %v57_v34  ;;  %v2709_v45 = vpack.c.bf16 %v108_v37, %v59_v36 }
  0x42   :  { %v207_v42 = vld [vmem:[#allocation5 + $0x4d0] sm:$0xff]  ;;  %v2703_v46 = vpack.c.bf16 %v205_v40, %v156_v38  ;;  %v204_v48 = vld [vmem:[#allocation5 + $0x4b8] sm:$0xff]  ;;  %v157_v50 = vld [vmem:[#allocation5 + $0x340] sm:$0xff] }
  0x43   :  { %v155_v47 = vld [vmem:[#allocation5 + $0x330] sm:$0xff]  ;;  %v2711_v49 = vpack.c.bf16 %v207_v42, %v158_v41  ;;  %v206_v51 = vld [vmem:[#allocation5 + $0x4c8] sm:$0xff]  ;;  %v256_v55 = vld [vmem:[#allocation5 + $0x658] sm:$0xff] }
  0x44   :  { %570 = vmatpush1.msra.mxu0 %v249_v27  ;;  %641 = vmatpush1.msra.mxu1 %v251_v31  ;;  %v2705_v52 = vpack.c.bf16 %v204_v48, %v155_v47  ;;  %v2713_v53 = vpack.c.bf16 %v206_v51, %v157_v50  ;;  %v254_v54 = vld [vmem:[#allocation5 + $0x648] sm:$0xff]  ;;  %v253_v57 = vld [vmem:[#allocation5 + $0x640] sm:$0xff]  ;;  %v111_v58 = vld [vmem:[#allocation5 + $0x1d0] sm:$0xff] }
  0x45   :  { %2639 = vmatmul.mubr.msk.f32.vlgmr.msra.gmra.mrb[0].mxu0 %vm557_vm0, %v3053_v32  ;;  %2640 = vmatmul.mubr.msk.f32.vlgmr.msra.gmra.mrb[0].mxu1 %vm557_vm0, %v3053_v32  ;;  %v62_v56 = vld [vmem:[#allocation5 + $0x48] sm:$0xff]  ;;  %v64_v59 = vld [vmem:[#allocation5 + $0x58] sm:$0xff]  ;;  %v113_v60 = vld [vmem:[#allocation5 + $0x1e0] sm:$0xff] }
  0x46   :  { %2700 = vmatprep.subr.bf16.mxu0 %v2699_v39  ;;  %2708 = vmatprep.subr.bf16.mxu1 %v2707_v43  ;;  %v61_v61 = vld [vmem:[#allocation5 + $0x40] sm:$0xff]  ;;  %v110_v62 = vld [vmem:[#allocation5 + $0x1c8] sm:$0xff]  ;;  %v63_v63 = vld [vmem:[#allocation5 + $0x50] sm:$0xff]  ;;  %v2715_v5 = vpack.c.bf16 %v111_v58, %v62_v56  ;;  %v2723_v8 = vpack.c.bf16 %v113_v60, %v64_v59 }
  0x47   :  { %2702 = vmatpush1.bf16.msra.mxu0 %v2701_v44  ;;  %2710 = vmatpush1.bf16.msra.mxu1 %v2709_v45  ;;  %v112_v1 = vld [vmem:[#allocation5 + $0x1d8] sm:$0xff]  ;;  %v209_v3 = vld [vmem:[#allocation5 + $0x4e0] sm:$0xff]  ;;  %v255_v4 = vld [vmem:[#allocation5 + $0x650] sm:$0xff]  ;;  %v2717_v9 = vpack.c.bf16 %v110_v62, %v61_v61 }
  0x48   :  { %2704 = vmatprep.subr.bf16.mxu0 %v2703_v46  ;;  %2712 = vmatprep.subr.bf16.mxu1 %v2711_v49  ;;  %v160_v2 = vld [vmem:[#allocation5 + $0x358] sm:$0xff]  ;;  %v162_v6 = vld [vmem:[#allocation5 + $0x368] sm:$0xff]  ;;  %v211_v7 = vld [vmem:[#allocation5 + $0x4f0] sm:$0xff]  ;;  %v2725_v10 = vpack.c.bf16 %v112_v1, %v63_v63 }
  0x49   :  { %767 = vmatprep.mubr.f32.mxu0 %v2990_v0  ;;  %838 = vmatprep.mubr.f32.mxu1 %v2990_v0  ;;  %v2719_v11 = vpack.c.bf16 %v209_v3, %v160_v2  ;;  %v159_v12 = vld [vmem:[#allocation5 + $0x350] sm:$0xff]  ;;  %v208_v13 = vld [vmem:[#allocation5 + $0x4d8] sm:$0xff]  ;;  %v2727_v14 = vpack.c.bf16 %v211_v7, %v162_v6  ;;  %v161_v15 = vld [vmem:[#allocation5 + $0x360] sm:$0xff] }
  0x4a   :  { %v210_v16 = vld [vmem:[#allocation5 + $0x4e8] sm:$0xff]  ;;  %v2721_v17 = vpack.c.bf16 %v208_v13, %v159_v12  ;;  %v260_v20 = vld [vmem:[#allocation5 + $0x678] sm:$0xff]  ;;  %v257_v22 = vld [vmem:[#allocation5 + $0x660] sm:$0xff] }
  0x4b   :  { %2706 = vmatpush1.bf16.msra.mxu0 %v2705_v52  ;;  %2714 = vmatpush1.bf16.msra.mxu1 %v2713_v53  ;;  %v2729_v18 = vpack.c.bf16 %v210_v16, %v161_v15  ;;  %v258_v19 = vld [vmem:[#allocation5 + $0x668] sm:$0xff]  ;;  %v115_v23 = vld [vmem:[#allocation5 + $0x1f0] sm:$0xff]  ;;  %v68_v24 = vld [vmem:[#allocation5 + $0x78] sm:$0xff] }
  0x4c   :  { %711 = vmatprep.subr.mxu0 %v254_v54  ;;  %782 = vmatprep.subr.mxu1 %v256_v55  ;;  %v66_v21 = vld [vmem:[#allocation5 + $0x68] sm:$0xff]  ;;  %v117_v25 = vld [vmem:[#allocation5 + $0x200] sm:$0xff]  ;;  %v67_v28 = vld [vmem:[#allocation5 + $0x70] sm:$0xff] }
  0x4d   :  { %v65_v26 = vld [vmem:[#allocation5 + $0x60] sm:$0xff]  ;;  %v114_v27 = vld [vmem:[#allocation5 + $0x1e8] sm:$0xff]  ;;  %v116_v29 = vld [vmem:[#allocation5 + $0x1f8] sm:$0xff]  ;;  %v2731_v34 = vpack.c.bf16 %v115_v23, %v66_v21  ;;  %v2739_v37 = vpack.c.bf16 %v117_v25, %v68_v24 }
  0x4e   :  { %v164_v30 = vld [vmem:[#allocation5 + $0x378] sm:$0xff]  ;;  %v213_v31 = vld [vmem:[#allocation5 + $0x500] sm:$0xff]  ;;  %v259_v33 = vld [vmem:[#allocation5 + $0x670] sm:$0xff]  ;;  %v2733_v38 = vpack.c.bf16 %v114_v27, %v65_v26  ;;  %v2741_v39 = vpack.c.bf16 %v116_v29, %v67_v28 }
  0x4f   :  { %712 = vmatpush1.msra.mxu0 %v253_v57  ;;  %783 = vmatpush1.msra.mxu1 %v255_v4  ;;  %v166_v35 = vld [vmem:[#allocation5 + $0x388] sm:$0xff]  ;;  %v215_v36 = vld [vmem:[#allocation5 + $0x510] sm:$0xff]  ;;  %v2735_v40 = vpack.c.bf16 %v213_v31, %v164_v30  ;;  %v212_v42 = vld [vmem:[#allocation5 + $0x4f8] sm:$0xff] }
  0x50   :  { %2641 = vmatmul.mubr.msk.f32.vlgmr.msra.gmra.mrb[2].mxu0 %vm557_vm0, %v3053_v32  ;;  %2642 = vmatmul.mubr.msk.f32.vlgmr.msra.gmra.mrb[2].mxu1 %vm557_vm0, %v3053_v32  ;;  %v163_v41 = vld [vmem:[#allocation5 + $0x370] sm:$0xff]  ;;  %v2743_v43 = vpack.c.bf16 %v215_v36, %v166_v35  ;;  %v165_v44 = vld [vmem:[#allocation5 + $0x380] sm:$0xff]  ;;  %v214_v45 = vld [vmem:[#allocation5 + $0x508] sm:$0xff] }
  0x51   :  { %2716 = vmatprep.subr.bf16.mxu0 %v2715_v5  ;;  %2724 = vmatprep.subr.bf16.mxu1 %v2723_v8  ;;  %v2737_v46 = vpack.c.bf16 %v212_v42, %v163_v41  ;;  %v2745_v47 = vpack.c.bf16 %v214_v45, %v165_v44  ;;  %v262_v48 = vld [vmem:[#allocation5 + $0x688] sm:$0xff]  ;;  %v264_v49 = vld [vmem:[#allocation5 + $0x698] sm:$0xff]  ;;  %v261_v51 = vld [vmem:[#allocation5 + $0x680] sm:$0xff] }
  0x52   :  { %2718 = vmatpush1.bf16.msra.mxu0 %v2717_v9  ;;  %2726 = vmatpush1.bf16.msra.mxu1 %v2725_v10  ;;  %v70_v50 = vld [vmem:[#allocation5 + $0x88] sm:$0xff]  ;;  %v119_v52 = vld [vmem:[#allocation5 + $0x210] sm:$0xff]  ;;  %v72_v53 = vld [vmem:[#allocation5 + $0x98] sm:$0xff] }
  0x53   :  { %2720 = vmatprep.subr.bf16.mxu0 %v2719_v11  ;;  %2728 = vmatprep.subr.bf16.mxu1 %v2727_v14  ;;  %v121_v54 = vld [vmem:[#allocation5 + $0x220] sm:$0xff]  ;;  %v118_v56 = vld [vmem:[#allocation5 + $0x208] sm:$0xff]  ;;  %v71_v57 = vld [vmem:[#allocation5 + $0x90] sm:$0xff]  ;;  %v2747_v62 = vpack.c.bf16 %v119_v52, %v70_v50 }
  0x54   :  { %909 = vmatprep.mubr.f32.mxu0 %v2990_v0  ;;  %980 = vmatprep.mubr.f32.mxu1 %v2990_v0  ;;  %v69_v55 = vld [vmem:[#allocation5 + $0x80] sm:$0xff]  ;;  %v120_v58 = vld [vmem:[#allocation5 + $0x218] sm:$0xff]  ;;  %v263_v61 = vld [vmem:[#allocation5 + $0x690] sm:$0xff]  ;;  %v2755_v2 = vpack.c.bf16 %v121_v54, %v72_v53 }
  0x55   :  { %v168_v59 = vld [vmem:[#allocation5 + $0x398] sm:$0xff]  ;;  %v217_v60 = vld [vmem:[#allocation5 + $0x520] sm:$0xff]  ;;  %v170_v63 = vld [vmem:[#allocation5 + $0x3a8] sm:$0xff]  ;;  %v2749_v3 = vpack.c.bf16 %v118_v56, %v69_v55  ;;  %v2757_v4 = vpack.c.bf16 %v120_v58, %v71_v57 }
  0x56   :  { %2722 = vmatpush1.bf16.msra.mxu0 %v2721_v17  ;;  %2730 = vmatpush1.bf16.msra.mxu1 %v2729_v18  ;;  %v219_v1 = vld [vmem:[#allocation5 + $0x530] sm:$0xff]  ;;  %v2751_v5 = vpack.c.bf16 %v217_v60, %v168_v59  ;;  %v216_v7 = vld [vmem:[#allocation5 + $0x518] sm:$0xff]  ;;  %v169_v9 = vld [vmem:[#allocation5 + $0x3a0] sm:$0xff] }
  0x57   :  { %853 = vmatprep.subr.mxu0 %v258_v19  ;;  %924 = vmatprep.subr.mxu1 %v260_v20  ;;  %v167_v6 = vld [vmem:[#allocation5 + $0x390] sm:$0xff]  ;;  %v2759_v8 = vpack.c.bf16 %v219_v1, %v170_v63  ;;  %v218_v10 = vld [vmem:[#allocation5 + $0x528] sm:$0xff]  ;;  %v268_v14 = vld [vmem:[#allocation5 + $0x6b8] sm:$0xff] }
  0x58   :  { %v2753_v11 = vpack.c.bf16 %v216_v7, %v167_v6  ;;  %v2761_v12 = vpack.c.bf16 %v218_v10, %v169_v9  ;;  %v266_v13 = vld [vmem:[#allocation5 + $0x6a8] sm:$0xff]  ;;  %v265_v16 = vld [vmem:[#allocation5 + $0x6a0] sm:$0xff]  ;;  %v123_v17 = vld [vmem:[#allocation5 + $0x230] sm:$0xff] }
  0x59   :  { %v74_v15 = vld [vmem:[#allocation5 + $0xa8] sm:$0xff]  ;;  %v76_v18 = vld [vmem:[#allocation5 + $0xb8] sm:$0xff]  ;;  %v125_v19 = vld [vmem:[#allocation5 + $0x240] sm:$0xff] }
  0x5a   :  { %854 = vmatpush1.msra.mxu0 %v257_v22  ;;  %925 = vmatpush1.msra.mxu1 %v259_v33  ;;  %v73_v20 = vld [vmem:[#allocation5 + $0xa0] sm:$0xff]  ;;  %v122_v21 = vld [vmem:[#allocation5 + $0x228] sm:$0xff]  ;;  %v75_v22 = vld [vmem:[#allocation5 + $0xb0] sm:$0xff]  ;;  %v2763_v27 = vpack.c.bf16 %v123_v17, %v74_v15  ;;  %v2771_v30 = vpack.c.bf16 %v125_v19, %v76_v18 }
  0x5b   :  { %2643 = vmatmul.mubr.msk.f32.vlgmr.msra.gmra.mrb[4].mxu0 %vm557_vm0, %v3053_v32  ;;  %2644 = vmatmul.mubr.msk.f32.vlgmr.msra.gmra.mrb[4].mxu1 %vm557_vm0, %v3053_v32  ;;  %v124_v23 = vld [vmem:[#allocation5 + $0x238] sm:$0xff]  ;;  %v221_v25 = vld [vmem:[#allocation5 + $0x540] sm:$0xff]  ;;  %v267_v26 = vld [vmem:[#allocation5 + $0x6b0] sm:$0xff]  ;;  %v2765_v31 = vpack.c.bf16 %v122_v21, %v73_v20 }
  0x5c   :  { %2732 = vmatprep.subr.bf16.mxu0 %v2731_v34  ;;  %2740 = vmatprep.subr.bf16.mxu1 %v2739_v37  ;;  %v172_v24 = vld [vmem:[#allocation5 + $0x3b8] sm:$0xff]  ;;  %v174_v28 = vld [vmem:[#allocation5 + $0x3c8] sm:$0xff]  ;;  %v223_v29 = vld [vmem:[#allocation5 + $0x550] sm:$0xff]  ;;  %v2773_v33 = vpack.c.bf16 %v124_v23, %v75_v22 }
  0x5d   :  { %2734 = vmatpush1.bf16.msra.mxu0 %v2733_v38  ;;  %2742 = vmatpush1.bf16.msra.mxu1 %v2741_v39  ;;  %v2767_v34 = vpack.c.bf16 %v221_v25, %v172_v24  ;;  %v171_v35 = vld [vmem:[#allocation5 + $0x3b0] sm:$0xff]  ;;  %v220_v36 = vld [vmem:[#allocation5 + $0x538] sm:$0xff]  ;;  %v2775_v37 = vpack.c.bf16 %v223_v29, %v174_v28  ;;  %v173_v38 = vld [vmem:[#allocation5 + $0x3c0] sm:$0xff] }
  0x5e   :  { %2736 = vmatprep.subr.bf16.mxu0 %v2735_v40  ;;  %2744 = vmatprep.subr.bf16.mxu1 %v2743_v43  ;;  %v222_v39 = vld [vmem:[#allocation5 + $0x548] sm:$0xff]  ;;  %v2769_v40 = vpack.c.bf16 %v220_v36, %v171_v35  ;;  %v272_v43 = vld [vmem:[#allocation5 + $0x6d8] sm:$0xff]  ;;  %v269_v45 = vld [vmem:[#allocation5 + $0x6c0] sm:$0xff] }
  0x5f   :  { %1051 = vmatprep.mubr.f32.mxu0 %v2990_v0  ;;  %1122 = vmatprep.mubr.f32.mxu1 %v2990_v0  ;;  %v2777_v41 = vpack.c.bf16 %v222_v39, %v173_v38  ;;  %v270_v42 = vld [vmem:[#allocation5 + $0x6c8] sm:$0xff]  ;;  %v128_v52 = vld [vmem:[#allocation5 + $0x258] sm:$0xff]  ;;  %v225_v54 = vld [vmem:[#allocation5 + $0x560] sm:$0xff] }
  0x60   :  { %v78_v44 = vld [vmem:[#allocation5 + $0xc8] sm:$0xff]  ;;  %v176_v53 = vld [vmem:[#allocation5 + $0x3d8] sm:$0xff]  ;;  %v271_v55 = vld [vmem:[#allocation5 + $0x6d0] sm:$0xff] }
  0x61   :  { %2738 = vmatpush1.bf16.msra.mxu0 %v2737_v46  ;;  %2746 = vmatpush1.bf16.msra.mxu1 %v2745_v47  ;;  %v127_v46 = vld [vmem:[#allocation5 + $0x250] sm:$0xff]  ;;  %v80_v47 = vld [vmem:[#allocation5 + $0xd8] sm:$0xff]  ;;  %v126_v50 = vld [vmem:[#allocation5 + $0x248] sm:$0xff] }
  0x62   :  { %995 = vmatprep.subr.mxu0 %v262_v48  ;;  %1066 = vmatprep.subr.mxu1 %v264_v49  ;;  %v129_v48 = vld [vmem:[#allocation5 + $0x260] sm:$0xff]  ;;  %v2779_v56 = vpack.c.bf16 %v127_v46, %v78_v44  ;;  %v178_v57 = vld [vmem:[#allocation5 + $0x3e8] sm:$0xff]  ;;  %v227_v58 = vld [vmem:[#allocation5 + $0x570] sm:$0xff] }
  0x63   :  { %v77_v49 = vld [vmem:[#allocation5 + $0xc0] sm:$0xff]  ;;  %v2787_v59 = vpack.c.bf16 %v129_v48, %v80_v47  ;;  %v175_v63 = vld [vmem:[#allocation5 + $0x3d0] sm:$0xff]  ;;  %v224_v1 = vld [vmem:[#allocation5 + $0x558] sm:$0xff] }
  0x64   :  { %v2781_v60 = vpack.c.bf16 %v126_v50, %v77_v49  ;;  %v274_v7 = vld [vmem:[#allocation5 + $0x6e8] sm:$0xff]  ;;  %v273_v10 = vld [vmem:[#allocation5 + $0x6e0] sm:$0xff]  ;;  %v132_v17 = vld [vmem:[#allocation5 + $0x278] sm:$0xff] }
  0x65   :  { %996 = vmatpush1.msra.mxu0 %v261_v51  ;;  %1067 = vmatpush1.msra.mxu1 %v263_v61  ;;  %v79_v51 = vld [vmem:[#allocation5 + $0xd0] sm:$0xff]  ;;  %v82_v9 = vld [vmem:[#allocation5 + $0xe8] sm:$0xff]  ;;  %v180_v18 = vld [vmem:[#allocation5 + $0x3f8] sm:$0xff] }
  0x66   :  { %2645 = vmatmul.mubr.msk.f32.vlgmr.msra.gmra.mrb[6].mxu0 %vm557_vm0, %v3053_v32  ;;  %2646 = vmatmul.mubr.msk.f32.vlgmr.msra.gmra.mrb[6].mxu1 %vm557_vm0, %v3053_v32  ;;  %v2789_v61 = vpack.c.bf16 %v128_v52, %v79_v51  ;;  %v130_v15 = vld [vmem:[#allocation5 + $0x268] sm:$0xff]  ;;  %v229_v19 = vld [vmem:[#allocation5 + $0x580] sm:$0xff]  ;;  %v275_v20 = vld [vmem:[#allocation5 + $0x6f0] sm:$0xff] }
  0x67   :  { %2748 = vmatprep.subr.bf16.mxu0 %v2747_v62  ;;  %2756 = vmatprep.subr.bf16.mxu1 %v2755_v2  ;;  %v2783_v62 = vpack.c.bf16 %v225_v54, %v176_v53  ;;  %v2791_v2 = vpack.c.bf16 %v227_v58, %v178_v57  ;;  %v182_v22 = vld [vmem:[#allocation5 + $0x408] sm:$0xff]  ;;  %v231_v23 = vld [vmem:[#allocation5 + $0x590] sm:$0xff]  ;;  %v228_v29 = vld [vmem:[#allocation5 + $0x578] sm:$0xff] }
  0x68   :  { %2750 = vmatpush1.bf16.msra.mxu0 %v2749_v3  ;;  %2758 = vmatpush1.bf16.msra.mxu1 %v2757_v4  ;;  %v177_v3 = vld [vmem:[#allocation5 + $0x3e0] sm:$0xff]  ;;  %v226_v4 = vld [vmem:[#allocation5 + $0x568] sm:$0xff]  ;;  %v179_v28 = vld [vmem:[#allocation5 + $0x3f0] sm:$0xff] }
  0x69   :  { %2752 = vmatprep.subr.bf16.mxu0 %v2751_v5  ;;  %2760 = vmatprep.subr.bf16.mxu1 %v2759_v8  ;;  %v2785_v5 = vpack.c.bf16 %v224_v1, %v175_v63  ;;  %v2793_v6 = vpack.c.bf16 %v226_v4, %v177_v3  ;;  %v276_v8 = vld [vmem:[#allocation5 + $0x6f8] sm:$0xff]  ;;  %v278_v36 = vld [vmem:[#allocation5 + $0x708] sm:$0xff]  ;;  %v277_v39 = vld [vmem:[#allocation5 + $0x700] sm:$0xff] }
  0x6a   :  { %1193 = vmatprep.mubr.f32.mxu0 %v2990_v0  ;;  %1264 = vmatprep.mubr.f32.mxu1 %v2990_v0  ;;  %v86_v38 = vld [vmem:[#allocation5 + $0x108] sm:$0xff]  ;;  %v136_v46 = vld [vmem:[#allocation5 + $0x298] sm:$0xff]  ;;  %v233_v48 = vld [vmem:[#allocation5 + $0x5a0] sm:$0xff] }
  0x6b   :  { %v134_v44 = vld [vmem:[#allocation5 + $0x288] sm:$0xff]  ;;  %v184_v47 = vld [vmem:[#allocation5 + $0x418] sm:$0xff]  ;;  %v279_v49 = vld [vmem:[#allocation5 + $0x710] sm:$0xff] }
  0x6c   :  { %2754 = vmatpush1.bf16.msra.mxu0 %v2753_v11  ;;  %2762 = vmatpush1.bf16.msra.mxu1 %v2761_v12  ;;  %v131_v11 = vld [vmem:[#allocation5 + $0x270] sm:$0xff]  ;;  %v84_v12 = vld [vmem:[#allocation5 + $0xf8] sm:$0xff]  ;;  %v186_v51 = vld [vmem:[#allocation5 + $0x428] sm:$0xff] }
  0x6d   :  { %1137 = vmatprep.subr.mxu0 %v266_v13  ;;  %1208 = vmatprep.subr.mxu1 %v268_v14  ;;  %v133_v13 = vld [vmem:[#allocation5 + $0x280] sm:$0xff]  ;;  %v2795_v21 = vpack.c.bf16 %v131_v11, %v82_v9  ;;  %v235_v52 = vld [vmem:[#allocation5 + $0x5b0] sm:$0xff]  ;;  %v232_v58 = vld [vmem:[#allocation5 + $0x598] sm:$0xff] }
  0x6e   :  { %v81_v14 = vld [vmem:[#allocation5 + $0xe0] sm:$0xff]  ;;  %v2803_v24 = vpack.c.bf16 %v133_v13, %v84_v12  ;;  %v183_v57 = vld [vmem:[#allocation5 + $0x410] sm:$0xff]  ;;  %v282_v1 = vld [vmem:[#allocation5 + $0x728] sm:$0xff] }
  0x6f   :  { %v2797_v25 = vpack.c.bf16 %v130_v15, %v81_v14  ;;  %v90_v3 = vld [vmem:[#allocation5 + $0x128] sm:$0xff]  ;;  %v281_v4 = vld [vmem:[#allocation5 + $0x720] sm:$0xff]  ;;  %v140_v11 = vld [vmem:[#allocation5 + $0x2b8] sm:$0xff] }
  0x70   :  { %1138 = vmatpush1.msra.mxu0 %v265_v16  ;;  %1209 = vmatpush1.msra.mxu1 %v267_v26  ;;  %v83_v16 = vld [vmem:[#allocation5 + $0xf0] sm:$0xff]  ;;  %v138_v9 = vld [vmem:[#allocation5 + $0x2a8] sm:$0xff]  ;;  %v188_v12 = vld [vmem:[#allocation5 + $0x438] sm:$0xff] }
  0x71   :  { %2647 = vmatmul.mubr.msk.f32.vlgmr.msra.gmra.mrb[8].mxu0 %vm557_vm0, %v3053_v32  ;;  %2648 = vmatmul.mubr.msk.f32.vlgmr.msra.gmra.mrb[8].mxu1 %vm557_vm0, %v3053_v32  ;;  %v2805_v26 = vpack.c.bf16 %v132_v17, %v83_v16  ;;  %v237_v13 = vld [vmem:[#allocation5 + $0x5c0] sm:$0xff]  ;;  %v283_v14 = vld [vmem:[#allocation5 + $0x730] sm:$0xff]  ;;  %v190_v16 = vld [vmem:[#allocation5 + $0x448] sm:$0xff] }
  0x72   :  { %2764 = vmatprep.subr.bf16.mxu0 %v2763_v27  ;;  %2772 = vmatprep.subr.bf16.mxu1 %v2771_v30  ;;  %v2799_v27 = vpack.c.bf16 %v229_v19, %v180_v18  ;;  %v2807_v30 = vpack.c.bf16 %v231_v23, %v182_v22  ;;  %v239_v17 = vld [vmem:[#allocation5 + $0x5d0] sm:$0xff]  ;;  %v236_v23 = vld [vmem:[#allocation5 + $0x5b8] sm:$0xff] }
  0x73   :  { %2766 = vmatpush1.bf16.msra.mxu0 %v2765_v31  ;;  %2774 = vmatpush1.bf16.msra.mxu1 %v2773_v33  ;;  %v181_v31 = vld [vmem:[#allocation5 + $0x400] sm:$0xff]  ;;  %v230_v33 = vld [vmem:[#allocation5 + $0x588] sm:$0xff]  ;;  %v187_v22 = vld [vmem:[#allocation5 + $0x430] sm:$0xff] }
  0x74   :  { %2768 = vmatprep.subr.bf16.mxu0 %v2767_v34  ;;  %2776 = vmatprep.subr.bf16.mxu1 %v2775_v37  ;;  %v2801_v34 = vpack.c.bf16 %v228_v29, %v179_v28  ;;  %v2809_v35 = vpack.c.bf16 %v230_v33, %v181_v31  ;;  %v280_v37 = vld [vmem:[#allocation5 + $0x718] sm:$0xff]  ;;  %v286_v29 = vld [vmem:[#allocation5 + $0x748] sm:$0xff]  ;;  %v285_v33 = vld [vmem:[#allocation5 + $0x740] sm:$0xff] }
  0x75   :  { %1335 = vmatprep.mubr.f32.mxu0 %v2990_v0  ;;  %1406 = vmatprep.mubr.f32.mxu1 %v2990_v0  ;;  %v94_v31 = vld [vmem:[#allocation5 + $0x148] sm:$0xff] }
  0x77   :  { %2770 = vmatpush1.bf16.msra.mxu0 %v2769_v40  ;;  %2778 = vmatpush1.bf16.msra.mxu1 %v2777_v41  ;;  %v135_v40 = vld [vmem:[#allocation5 + $0x290] sm:$0xff]  ;;  %v88_v41 = vld [vmem:[#allocation5 + $0x118] sm:$0xff] }
  0x78   :  { %1279 = vmatprep.subr.mxu0 %v270_v42  ;;  %1350 = vmatprep.subr.mxu1 %v272_v43  ;;  %v137_v42 = vld [vmem:[#allocation5 + $0x2a0] sm:$0xff]  ;;  %v2811_v50 = vpack.c.bf16 %v135_v40, %v86_v38  ;;  %v142_v38 = vld [vmem:[#allocation5 + $0x2c8] sm:$0xff]  ;;  %v144_v40 = vld [vmem:[#allocation5 + $0x2d8] sm:$0xff] }
  0x79   :  { %v85_v43 = vld [vmem:[#allocation5 + $0x100] sm:$0xff]  ;;  %v2819_v53 = vpack.c.bf16 %v137_v42, %v88_v41  ;;  %v192_v41 = vld [vmem:[#allocation5 + $0x458] sm:$0xff] }
  0x7a   :  { %v2813_v54 = vpack.c.bf16 %v134_v44, %v85_v43  ;;  %v241_v42 = vld [vmem:[#allocation5 + $0x5e0] sm:$0xff]  ;;  %v287_v43 = vld [vmem:[#allocation5 + $0x750] sm:$0xff] }
  0x7b   :  { %1280 = vmatpush1.msra.mxu0 %v269_v45  ;;  %1351 = vmatpush1.msra.mxu1 %v271_v55  ;;  %v87_v45 = vld [vmem:[#allocation5 + $0x110] sm:$0xff] }
  0x7c   :  { %2649 = vmatmul.mubr.msk.f32.vlgmr.msra.gmra.mrb[10].mxu0 %vm557_vm0, %v3053_v32  ;;  %2650 = vmatmul.mubr.msk.f32.vlgmr.msra.gmra.mrb[10].mxu1 %vm557_vm0, %v3053_v32  ;;  %v2821_v55 = vpack.c.bf16 %v136_v46, %v87_v45  ;;  %v194_v45 = vld [vmem:[#allocation5 + $0x468] sm:$0xff]  ;;  %v243_v46 = vld [vmem:[#allocation5 + $0x5f0] sm:$0xff] }
  0x7d   :  { %2780 = vmatprep.subr.bf16.mxu0 %v2779_v56  ;;  %2788 = vmatprep.subr.bf16.mxu1 %v2787_v59  ;;  %v2815_v56 = vpack.c.bf16 %v233_v48, %v184_v47  ;;  %v2823_v59 = vpack.c.bf16 %v235_v52, %v186_v51  ;;  %v191_v51 = vld [vmem:[#allocation5 + $0x450] sm:$0xff]  ;;  %v240_v52 = vld [vmem:[#allocation5 + $0x5d8] sm:$0xff] }
  0x7e   :  { %2782 = vmatpush1.bf16.msra.mxu0 %v2781_v60  ;;  %2790 = vmatpush1.bf16.msra.mxu1 %v2789_v61  ;;  %v185_v60 = vld [vmem:[#allocation5 + $0x420] sm:$0xff]  ;;  %v234_v61 = vld [vmem:[#allocation5 + $0x5a8] sm:$0xff] }
  0x7f   :  { %2784 = vmatprep.subr.bf16.mxu0 %v2783_v62  ;;  %2792 = vmatprep.subr.bf16.mxu1 %v2791_v2  ;;  %v2817_v62 = vpack.c.bf16 %v232_v58, %v183_v57  ;;  %v2825_v63 = vpack.c.bf16 %v234_v61, %v185_v60  ;;  %v284_v2 = vld [vmem:[#allocation5 + $0x738] sm:$0xff]  ;;  %v290_v58 = vld [vmem:[#allocation5 + $0x768] sm:$0xff]  ;;  %v289_v61 = vld [vmem:[#allocation5 + $0x760] sm:$0xff] }
  0x80   :  { %1477 = vmatprep.mubr.f32.mxu0 %v2990_v0  ;;  %1548 = vmatprep.mubr.f32.mxu1 %v2990_v0  ;;  %v98_v60 = vld [vmem:[#allocation5 + $0x168] sm:$0xff] }
  0x82   :  { %2786 = vmatpush1.bf16.msra.mxu0 %v2785_v5  ;;  %2794 = vmatpush1.bf16.msra.mxu1 %v2793_v6  ;;  %v139_v5 = vld [vmem:[#allocation5 + $0x2b0] sm:$0xff]  ;;  %v92_v6 = vld [vmem:[#allocation5 + $0x138] sm:$0xff] }
  0x83   :  { %1421 = vmatprep.subr.mxu0 %v274_v7  ;;  %1492 = vmatprep.subr.mxu1 %v276_v8  ;;  %v141_v7 = vld [vmem:[#allocation5 + $0x2c0] sm:$0xff]  ;;  %v2827_v15 = vpack.c.bf16 %v139_v5, %v90_v3  ;;  %v146_v3 = vld [vmem:[#allocation5 + $0x2e8] sm:$0xff]  ;;  %v148_v5 = vld [vmem:[#allocation5 + $0x2f8] sm:$0xff] }
  0x84   :  { %v89_v8 = vld [vmem:[#allocation5 + $0x120] sm:$0xff]  ;;  %v2835_v18 = vpack.c.bf16 %v141_v7, %v92_v6  ;;  %v196_v6 = vld [vmem:[#allocation5 + $0x478] sm:$0xff] }
  0x85   :  { %v2829_v19 = vpack.c.bf16 %v138_v9, %v89_v8  ;;  %v245_v7 = vld [vmem:[#allocation5 + $0x600] sm:$0xff]  ;;  %v291_v8 = vld [vmem:[#allocation5 + $0x770] sm:$0xff] }
  0x86   :  { %1422 = vmatpush1.msra.mxu0 %v273_v10  ;;  %1493 = vmatpush1.msra.mxu1 %v275_v20  ;;  %v91_v10 = vld [vmem:[#allocation5 + $0x130] sm:$0xff] }
  0x87   :  { %2651 = vmatmul.mubr.msk.f32.vlgmr.msra.gmra.mrb[12].mxu0 %vm557_vm0, %v3053_v32  ;;  %2652 = vmatmul.mubr.msk.f32.vlgmr.msra.gmra.mrb[12].mxu1 %vm557_vm0, %v3053_v32  ;;  %v2837_v20 = vpack.c.bf16 %v140_v11, %v91_v10  ;;  %v198_v10 = vld [vmem:[#allocation5 + $0x488] sm:$0xff]  ;;  %v247_v11 = vld [vmem:[#allocation5 + $0x610] sm:$0xff] }
  0x88   :  { %2796 = vmatprep.subr.bf16.mxu0 %v2795_v21  ;;  %2804 = vmatprep.subr.bf16.mxu1 %v2803_v24  ;;  %v2831_v21 = vpack.c.bf16 %v237_v13, %v188_v12  ;;  %v2839_v24 = vpack.c.bf16 %v239_v17, %v190_v16  ;;  %v195_v16 = vld [vmem:[#allocation5 + $0x470] sm:$0xff]  ;;  %v244_v17 = vld [vmem:[#allocation5 + $0x5f8] sm:$0xff] }
  0x89   :  { %2798 = vmatpush1.bf16.msra.mxu0 %v2797_v25  ;;  %2806 = vmatpush1.bf16.msra.mxu1 %v2805_v26  ;;  %v189_v25 = vld [vmem:[#allocation5 + $0x440] sm:$0xff]  ;;  %v238_v26 = vld [vmem:[#allocation5 + $0x5c8] sm:$0xff] }
  0x8a   :  { %2800 = vmatprep.subr.bf16.mxu0 %v2799_v27  ;;  %2808 = vmatprep.subr.bf16.mxu1 %v2807_v30  ;;  %v2833_v27 = vpack.c.bf16 %v236_v23, %v187_v22  ;;  %v2841_v28 = vpack.c.bf16 %v238_v26, %v189_v25  ;;  %v288_v30 = vld [vmem:[#allocation5 + $0x758] sm:$0xff]  ;;  %v294_v23 = vld [vmem:[#allocation5 + $0x788] sm:$0xff]  ;;  %v101_v25 = vld [vmem:[#allocation5 + $0x180] sm:$0xff] }
  0x8b   :  { %1619 = vmatprep.mubr.f32.mxu0 %v2990_v0  ;;  %1690 = vmatprep.mubr.f32.mxu1 %v2990_v0  ;;  %v150_v26 = vld [vmem:[#allocation5 + $0x308] sm:$0xff] }
  0x8d   :  { %2802 = vmatpush1.bf16.msra.mxu0 %v2801_v34  ;;  %2810 = vmatpush1.bf16.msra.mxu1 %v2809_v35  ;;  %v143_v34 = vld [vmem:[#allocation5 + $0x2d0] sm:$0xff]  ;;  %v96_v35 = vld [vmem:[#allocation5 + $0x158] sm:$0xff] }
  0x8e   :  { %1563 = vmatprep.subr.mxu0 %v278_v36  ;;  %1634 = vmatprep.subr.mxu1 %v280_v37  ;;  %v145_v36 = vld [vmem:[#allocation5 + $0x2e0] sm:$0xff]  ;;  %v2843_v44 = vpack.c.bf16 %v143_v34, %v94_v31  ;;  %v248_v31 = vld [vmem:[#allocation5 + $0x618] sm:$0xff] }
  0x8f   :  { %v93_v37 = vld [vmem:[#allocation5 + $0x140] sm:$0xff]  ;;  %v2851_v47 = vpack.c.bf16 %v145_v36, %v96_v35  ;;  %v312_v36 = vlaneseq }
  0x90   :  { %v2845_v48 = vpack.c.bf16 %v142_v38, %v93_v37  ;;  %v297_v35 = vld [vmem:[#allocation5 + $0x7a0] sm:$0xff] }
  0x91   :  { %1564 = vmatpush1.msra.mxu0 %v277_v39  ;;  %1635 = vmatpush1.msra.mxu1 %v279_v49  ;;  %v95_v39 = vld [vmem:[#allocation5 + $0x150] sm:$0xff]  ;;  %v313_v37 = vshrl.u32 %v312_v36, 7 }
  0x92   :  { %2653 = vmatmul.mubr.msk.f32.vlgmr.msra.gmra.mrb[14].mxu0 %vm557_vm0, %v3053_v32  ;;  %2654 = vmatmul.mubr.msk.f32.vlgmr.msra.gmra.mrb[14].mxu1 %vm557_vm0, %v3053_v32  ;;  %v2853_v49 = vpack.c.bf16 %v144_v40, %v95_v39  ;;  %v298_v39 = vld [vmem:[#allocation7] sm:$0xff] }
  0x93   :  { %2812 = vmatprep.subr.bf16.mxu0 %v2811_v50  ;;  %2820 = vmatprep.subr.bf16.mxu1 %v2819_v53  ;;  %v2847_v50 = vpack.c.bf16 %v241_v42, %v192_v41  ;;  %v2855_v53 = vpack.c.bf16 %v243_v46, %v194_v45  ;;  %v3129_v38 = vsub.s32 0, %v313_v37  ;;  %v3131_v40 = vsub.s32 2, %v313_v37 }
  0x94   :  { %2814 = vmatpush1.bf16.msra.mxu0 %v2813_v54  ;;  %2822 = vmatpush1.bf16.msra.mxu1 %v2821_v55  ;;  %v193_v54 = vld [vmem:[#allocation5 + $0x460] sm:$0xff]  ;;  %v242_v55 = vld [vmem:[#allocation5 + $0x5e8] sm:$0xff]  ;;  %v3133_v41 = vsub.s32 1, %v313_v37  ;;  %v2993_v42 = vmov 1983009808  }
  0x95   :  { %2816 = vmatprep.subr.bf16.mxu0 %v2815_v56  ;;  %2824 = vmatprep.subr.bf16.mxu1 %v2823_v59  ;;  %v2849_v56 = vpack.c.bf16 %v240_v52, %v191_v51  ;;  %v2857_v57 = vpack.c.bf16 %v242_v55, %v193_v54  ;;  %v292_v59 = vld [vmem:[#allocation5 + $0x778] sm:$0xff]  ;;  %v323_v45 = vrot.slane %v298_v39, %v3131_v40 }
  0x96   :  { %1761 = vmatprep.mubr.f32.mxu0 %v2990_v0  ;;  %1832 = vmatprep.mubr.f32.mxu1 %v2990_v0  ;;  %v319_v46 = vrot.slane %v298_v39, %v3133_v41 }
  0x98   :  { %2818 = vmatpush1.bf16.msra.mxu0 %v2817_v62  ;;  %2826 = vmatpush1.bf16.msra.mxu1 %v2825_v63  ;;  %v147_v62 = vld [vmem:[#allocation5 + $0x2f0] sm:$0xff]  ;;  %v100_v63 = vld [vmem:[#allocation5 + $0x178] sm:$0xff] }
  0x99   :  { %1705 = vmatprep.subr.mxu0 %v282_v1  ;;  %1776 = vmatprep.subr.mxu1 %v284_v2  ;;  %v149_v1 = vld [vmem:[#allocation5 + $0x300] sm:$0xff]  ;;  %v2859_v9 = vpack.c.bf16 %v147_v62, %v98_v60  ;;  %v3145_v60 = vsub.s32 6, %v313_v37 }
  0x9a   :  { %v97_v2 = vld [vmem:[#allocation5 + $0x160] sm:$0xff]  ;;  %v2867_v12 = vpack.c.bf16 %v149_v1, %v100_v63  ;;  %v3150_v63 = vsub.s32 7, %v313_v37 }
  0x9b   :  { %v2861_v13 = vpack.c.bf16 %v146_v3, %v97_v2 }
  0x9c   :  { %1706 = vmatpush1.msra.mxu0 %v281_v4  ;;  %1777 = vmatpush1.msra.mxu1 %v283_v14  ;;  %v99_v4 = vld [vmem:[#allocation5 + $0x170] sm:$0xff] }
  0x9d   :  { %2655 = vmatmul.mubr.msk.f32.vlgmr.msra.gmra.mrb[16].mxu0 %vm557_vm0, %v3053_v32  ;;  %2656 = vmatmul.mubr.msk.f32.vlgmr.msra.gmra.mrb[16].mxu1 %vm557_vm0, %v3053_v32  ;;  %v2869_v14 = vpack.c.bf16 %v148_v5, %v99_v4  ;;  %v339_v4 = vrot.slane %v298_v39, %v3145_v60 }
  0x9e   :  { %2828 = vmatprep.subr.bf16.mxu0 %v2827_v15  ;;  %2836 = vmatprep.subr.bf16.mxu1 %v2835_v18  ;;  %v2863_v15 = vpack.c.bf16 %v245_v7, %v196_v6  ;;  %v2871_v18 = vpack.c.bf16 %v247_v11, %v198_v10  ;;  %v343_v6 = vrot.slane %v298_v39, %v3150_v63 }
  0x9f   :  { %2830 = vmatpush1.bf16.msra.mxu0 %v2829_v19  ;;  %2838 = vmatpush1.bf16.msra.mxu1 %v2837_v20  ;;  %v197_v19 = vld [vmem:[#allocation5 + $0x480] sm:$0xff]  ;;  %v246_v20 = vld [vmem:[#allocation5 + $0x608] sm:$0xff] }
  0xa0   :  { %2832 = vmatprep.subr.bf16.mxu0 %v2831_v21  ;;  %2840 = vmatprep.subr.bf16.mxu1 %v2839_v24  ;;  %v2865_v21 = vpack.c.bf16 %v244_v17, %v195_v16  ;;  %v2873_v22 = vpack.c.bf16 %v246_v20, %v197_v19  ;;  %v296_v24 = vld [vmem:[#allocation5 + $0x798] sm:$0xff]  ;;  %v299_v17 = vld [vmem:[#allocation7 + $0x8] sm:$0xff] }
  0xa1   :  { %1903 = vmatprep.mubr.f32.mxu0 %v2990_v0  ;;  %1974 = vmatprep.mubr.f32.mxu1 %v2990_v0  ;;  %v347_v20 = vrot.slane %v299_v17, %v3129_v38 }
  0xa3   :  { %2834 = vmatpush1.bf16.msra.mxu0 %v2833_v27  ;;  %2842 = vmatpush1.bf16.msra.mxu1 %v2841_v28  ;;  %v293_v27 = vld [vmem:[#allocation5 + $0x780] sm:$0xff]  ;;  %v295_v28 = vld [vmem:[#allocation5 + $0x790] sm:$0xff] }
  0xa4   :  { %1847 = vmatprep.subr.mxu0 %v286_v29  ;;  %1918 = vmatprep.subr.mxu1 %v288_v30  ;;  %v2876_v29 = vpack.c.bf16 %v150_v26, %v101_v25  ;;  %v199_v30 = vld [vmem:[#allocation5 + $0x490] sm:$0xff] }
  0xa5   :  { %v2879_v34 = vpack.c.bf16 %v248_v31, %v199_v30 }
  0xa7   :  { %1848 = vmatpush1.msra.mxu0 %v285_v33  ;;  %1919 = vmatpush1.msra.mxu1 %v287_v43  ;;  %v2991_v33 = vmov 0.0|0.0   ;;  %v2387_v43 = vunpack.c.l.s4 %v2993_v42 }
  0xa8   :  { %2657 = vmatmul.mubr.msk.f32.vlgmr.msra.gmra.mrb[18].mxu0 %vm557_vm0, %v3053_v32  ;;  %2658 = vmatmul.mubr.msk.f32.vlgmr.msra.gmra.mrb[18].mxu1 %vm557_vm0, %v3053_v32 }
  0xa9   :  { %2844 = vmatprep.subr.bf16.mxu0 %v2843_v44  ;;  %2852 = vmatprep.subr.bf16.mxu1 %v2851_v47  ;;  %v3135_v44 = vsub.s32 3, %v313_v37 }
  0xaa   :  { %2846 = vmatpush1.bf16.msra.mxu0 %v2845_v48  ;;  %2854 = vmatpush1.bf16.msra.mxu1 %v2853_v49 }
  0xab   :  { %2848 = vmatprep.subr.bf16.mxu0 %v2847_v50  ;;  %2856 = vmatprep.subr.bf16.mxu1 %v2855_v53  ;;  %v327_v47 = vrot.slane %v298_v39, %v3135_v44 }
  0xac   :  { %2045 = vmatprep.mubr.f32.mxu0 %v2990_v0  ;;  %2116 = vmatprep.mubr.f32.mxu1 %v2990_v0 }
  0xae   :  { %2850 = vmatpush1.bf16.msra.mxu0 %v2849_v56  ;;  %2858 = vmatpush1.bf16.msra.mxu1 %v2857_v57 }
  0xaf   :  { %1989 = vmatprep.subr.mxu0 %v290_v58  ;;  %2060 = vmatprep.subr.mxu1 %v292_v59  ;;  %v3143_v58 = vsub.s32 4, %v313_v37 }
  0xb1   :  { %v331_v2 = vrot.slane %v298_v39, %v3143_v58 }
  0xb2   :  { %1990 = vmatpush1.msra.mxu0 %v289_v61  ;;  %2061 = vmatpush1.msra.mxu1 %v291_v8  ;;  %v3147_v61 = vsub.s32 5, %v313_v37 }
  0xb3   :  { %2659 = vmatmul.mubr.msk.f32.vlgmr.msra.gmra.mrb[20].mxu0 %vm557_vm0, %v3053_v32  ;;  %2660 = vmatmul.mubr.msk.f32.vlgmr.msra.gmra.mrb[20].mxu1 %vm557_vm0, %v3053_v32 }
  0xb4   :  { %2860 = vmatprep.subr.bf16.mxu0 %v2859_v9  ;;  %2868 = vmatprep.subr.bf16.mxu1 %v2867_v12  ;;  %v335_v5 = vrot.slane %v298_v39, %v3147_v61 }
  0xb5   :  { %2862 = vmatpush1.bf16.msra.mxu0 %v2861_v13  ;;  %2870 = vmatpush1.bf16.msra.mxu1 %v2869_v14 }
  0xb6   :  { %2864 = vmatprep.subr.bf16.mxu0 %v2863_v15  ;;  %2872 = vmatprep.subr.bf16.mxu1 %v2871_v18 }
  0xb7   :  { %2187 = vmatprep.mubr.f32.mxu0 %v2990_v0  ;;  %2258 = vmatprep.mubr.f32.mxu1 %v2990_v0 }
  0xb9   :  { %2866 = vmatpush1.bf16.msra.mxu0 %v2865_v21  ;;  %2874 = vmatpush1.bf16.msra.mxu1 %v2873_v22  ;;  %v355_v22 = vrot.slane %v299_v17, %v3131_v40 }
  0xba   :  { %2131 = vmatprep.subr.mxu0 %v294_v23  ;;  %2202 = vmatprep.subr.mxu1 %v296_v24  ;;  %v351_v23 = vrot.slane %v299_v17, %v3133_v41  ;;  %v359_v24 = vrot.slane %v299_v17, %v3135_v44 }
  0xbd   :  { %2132 = vmatpush1.msra.mxu0 %v293_v27  ;;  %2203 = vmatpush1.msra.mxu1 %v295_v28 }
  0xbe   :  { %2661 = vmatmul.mubr.msk.f32.vlgmr.msra.gmra.mrb[22].mxu0 %vm557_vm0, %v3053_v32  ;;  %2662 = vmatmul.mubr.msk.f32.vlgmr.msra.gmra.mrb[22].mxu1 %vm557_vm0, %v3053_v32 }
  0xbf   :  { %2875 = vmatprep.subr.bf16.mxu0 %v2991_v33  ;;  %2680 = vmatprep.mubr.msk.f32.mxu0 %vm2992_vm1, %v2990_v0 }
  0xc0   :  { %2877 = vmatpush3.bf16.msra.mxu0 %v2876_v29 }
  0xc1   :  { %2878 = vmatprep.subr.bf16.mxu0 %v2991_v33 }
  0xc4   :  { %2880 = vmatpush3.bf16.msra.mxu0 %v2879_v34 }
  0xc5   :  { %2678 = vmatprep.subr.mxu0 %v2990_v0  ;;  %v315_v0 = vrot.slane %v298_v39, %v3129_v38  ;;  %v363_v39 = vrot.slane %v299_v17, %v3143_v58 }
  0xc8   :  { %2679 = vmatpush3.msra.mxu0 %v297_v35 }
  0xc9   :  { %2681 = vmatmul.mubr.msk.f32.vlgmr.msra.gmra.mrb[24].mxu0 %vm557_vm0, %v3053_v32  ;;  %v2388_v32 = vunpack.c.0.s8 %v2387_v43  ;;  %v371_v43 = vrot.slane %v299_v17, %v3145_v60 }
  0xcb   :  { %v3141_v54 = vsub.s32 %v2388_v32, %v313_v37 }
 0x118   :  { %v627_v48 = vpop.f32.mrb[0].mxu0  ;;  %v698_v50 = vpop.f32.mrb[0].mxu1 }
 0x119   :  { %v628_v49 = vadd.f32 %v627_v48, %v315_v0  ;;  %v629_v51 = vpop.f32.mrb[1].mxu0  ;;  %v699_v52 = vadd.f32 %v698_v50, %v323_v45  ;;  %v700_v55 = vpop.f32.mrb[1].mxu1  ;;  %v367_v0 = vrot.slane %v299_v17, %v3147_v61  ;;  %v375_v45 = vrot.slane %v299_v17, %v3150_v63 }
 0x11a   :  { %v630_v53 = vadd.f32 %v629_v51, %v319_v46  ;;  %v701_v56 = vadd.f32 %v700_v55, %v327_v47 }
 0x11c   :  { %v2384_v57 = vcombine.low %v628_v49, %v630_v53  ;;  %v2385_v59 = vcombine.low %v699_v52, %v701_v56  ;;  %v300_v56 = vld [vmem:[#allocation7 + $0x10] sm:$0xff] }
 0x11d   :  { %v395_v17 = vrot.slane %v300_v56, %v3143_v58 }
 0x11e   :  { %v2392_v62 = vrot.slane %v2384_v57, %v3141_v54  ;;  %v2399_v1 = vrot.slane %v2385_v59, %v3141_v54 }
 0x120   :  { %v2400_v3 = vcombine.low %v2392_v62, %v2399_v1  ;;  %v379_v62 = vrot.slane %v300_v56, %v3129_v38 }
 0x122   :  { %2608 = vst [vmem:[#allocation8] sm:$0xff] %v2400_v3  ;;  %v383_v3 = vrot.slane %v300_v56, %v3133_v41 }
 0x123   :  { %v769_v7 = vpop.f32.mrb[2].mxu0  ;;  %v840_v9 = vpop.f32.mrb[2].mxu1 }
 0x124   :  { %v770_v8 = vadd.f32 %v769_v7, %v331_v2  ;;  %v771_v10 = vpop.f32.mrb[3].mxu0  ;;  %v841_v11 = vadd.f32 %v840_v9, %v339_v4  ;;  %v842_v13 = vpop.f32.mrb[3].mxu1  ;;  %v387_v2 = vrot.slane %v300_v56, %v3131_v40  ;;  %v391_v4 = vrot.slane %v300_v56, %v3135_v44 }
 0x125   :  { %v772_v12 = vadd.f32 %v771_v10, %v335_v5  ;;  %v843_v14 = vadd.f32 %v842_v13, %v343_v6 }
 0x127   :  { %v2401_v15 = vcombine.low %v770_v8, %v772_v12  ;;  %v2402_v16 = vcombine.low %v841_v11, %v843_v14 }
 0x129   :  { %v2409_v18 = vrot.slane %v2401_v15, %v3141_v54  ;;  %v2416_v19 = vrot.slane %v2402_v16, %v3141_v54 }
 0x12b   :  { %v2417_v21 = vcombine.low %v2409_v18, %v2416_v19  ;;  %v403_v19 = vrot.slane %v300_v56, %v3145_v60 }
 0x12d   :  { %2609 = vst [vmem:[#allocation8 + $0x8] sm:$0xff] %v2417_v21  ;;  %v407_v21 = vrot.slane %v300_v56, %v3150_v63 }
 0x12e   :  { %v911_v25 = vpop.f32.mrb[4].mxu0  ;;  %v982_v27 = vpop.f32.mrb[4].mxu1 }
 0x12f   :  { %v912_v26 = vadd.f32 %v911_v25, %v347_v20  ;;  %v913_v28 = vpop.f32.mrb[5].mxu0  ;;  %v983_v29 = vadd.f32 %v982_v27, %v355_v22  ;;  %v984_v31 = vpop.f32.mrb[5].mxu1  ;;  %v399_v20 = vrot.slane %v300_v56, %v3147_v61 }
 0x130   :  { %v914_v30 = vadd.f32 %v913_v28, %v351_v23  ;;  %v985_v33 = vadd.f32 %v984_v31, %v359_v24 }
 0x132   :  { %v2418_v34 = vcombine.low %v912_v26, %v914_v30  ;;  %v2419_v35 = vcombine.low %v983_v29, %v985_v33  ;;  %v301_v33 = vld [vmem:[#allocation7 + $0x18] sm:$0xff] }
 0x133   :  { %v427_v56 = vrot.slane %v301_v33, %v3143_v58 }
 0x134   :  { %v2426_v36 = vrot.slane %v2418_v34, %v3141_v54  ;;  %v2433_v37 = vrot.slane %v2419_v35, %v3141_v54 }
 0x136   :  { %v2434_v42 = vcombine.low %v2426_v36, %v2433_v37  ;;  %v411_v36 = vrot.slane %v301_v33, %v3129_v38 }
 0x138   :  { %2610 = vst [vmem:[#allocation8 + $0x10] sm:$0xff] %v2434_v42  ;;  %v415_v42 = vrot.slane %v301_v33, %v3133_v41 }
 0x139   :  { %v1053_v46 = vpop.f32.mrb[6].mxu0  ;;  %v1124_v47 = vpop.f32.mrb[6].mxu1 }
 0x13a   :  { %v1054_v32 = vadd.f32 %v1053_v46, %v363_v39  ;;  %v1055_v48 = vpop.f32.mrb[7].mxu0  ;;  %v1125_v49 = vadd.f32 %v1124_v47, %v371_v43  ;;  %v1126_v51 = vpop.f32.mrb[7].mxu1  ;;  %v419_v39 = vrot.slane %v301_v33, %v3131_v40  ;;  %v423_v43 = vrot.slane %v301_v33, %v3135_v44 }
 0x13b   :  { %v1056_v50 = vadd.f32 %v1055_v48, %v367_v0  ;;  %v1127_v52 = vadd.f32 %v1126_v51, %v375_v45 }
 0x13d   :  { %v2435_v53 = vcombine.low %v1054_v32, %v1056_v50  ;;  %v2436_v55 = vcombine.low %v1125_v49, %v1127_v52 }
 0x13f   :  { %v2443_v57 = vrot.slane %v2435_v53, %v3141_v54  ;;  %v2450_v59 = vrot.slane %v2436_v55, %v3141_v54 }
 0x141   :  { %v2451_v1 = vcombine.low %v2443_v57, %v2450_v59  ;;  %v435_v59 = vrot.slane %v301_v33, %v3145_v60 }
 0x143   :  { %2611 = vst [vmem:[#allocation8 + $0x18] sm:$0xff] %v2451_v1  ;;  %v439_v1 = vrot.slane %v301_v33, %v3150_v63 }
 0x144   :  { %v1195_v5 = vpop.f32.mrb[8].mxu0  ;;  %v1266_v7 = vpop.f32.mrb[8].mxu1 }
 0x145   :  { %v1196_v6 = vadd.f32 %v1195_v5, %v379_v62  ;;  %v1197_v8 = vpop.f32.mrb[9].mxu0  ;;  %v1267_v9 = vadd.f32 %v1266_v7, %v387_v2  ;;  %v1268_v11 = vpop.f32.mrb[9].mxu1  ;;  %v431_v62 = vrot.slane %v301_v33, %v3147_v61 }
 0x146   :  { %v1198_v10 = vadd.f32 %v1197_v8, %v383_v3  ;;  %v1269_v12 = vadd.f32 %v1268_v11, %v391_v4 }
 0x148   :  { %v2452_v13 = vcombine.low %v1196_v6, %v1198_v10  ;;  %v2453_v14 = vcombine.low %v1267_v9, %v1269_v12  ;;  %v302_v12 = vld [vmem:[#allocation7 + $0x20] sm:$0xff] }
 0x149   :  { %v459_v33 = vrot.slane %v302_v12, %v3143_v58 }
 0x14a   :  { %v2460_v15 = vrot.slane %v2452_v13, %v3141_v54  ;;  %v2467_v16 = vrot.slane %v2453_v14, %v3141_v54 }
 0x14c   :  { %v2468_v18 = vcombine.low %v2460_v15, %v2467_v16  ;;  %v443_v15 = vrot.slane %v302_v12, %v3129_v38 }
 0x14e   :  { %2612 = vst [vmem:[#allocation8 + $0x20] sm:$0xff] %v2468_v18  ;;  %v447_v18 = vrot.slane %v302_v12, %v3133_v41 }
 0x14f   :  { %v1337_v22 = vpop.f32.mrb[10].mxu0  ;;  %v1408_v24 = vpop.f32.mrb[10].mxu1 }
 0x150   :  { %v1338_v23 = vadd.f32 %v1337_v22, %v395_v17  ;;  %v1339_v25 = vpop.f32.mrb[11].mxu0  ;;  %v1409_v26 = vadd.f32 %v1408_v24, %v403_v19  ;;  %v1410_v28 = vpop.f32.mrb[11].mxu1  ;;  %v451_v17 = vrot.slane %v302_v12, %v3131_v40  ;;  %v455_v19 = vrot.slane %v302_v12, %v3135_v44 }
 0x151   :  { %v1340_v27 = vadd.f32 %v1339_v25, %v399_v20  ;;  %v1411_v29 = vadd.f32 %v1410_v28, %v407_v21 }
 0x153   :  { %v2469_v30 = vcombine.low %v1338_v23, %v1340_v27  ;;  %v2470_v31 = vcombine.low %v1409_v26, %v1411_v29 }
 0x155   :  { %v2477_v34 = vrot.slane %v2469_v30, %v3141_v54  ;;  %v2484_v35 = vrot.slane %v2470_v31, %v3141_v54 }
 0x157   :  { %v2485_v37 = vcombine.low %v2477_v34, %v2484_v35  ;;  %v467_v35 = vrot.slane %v302_v12, %v3145_v60 }
 0x159   :  { %2613 = vst [vmem:[#allocation8 + $0x28] sm:$0xff] %v2485_v37  ;;  %v471_v37 = vrot.slane %v302_v12, %v3150_v63 }
 0x15a   :  { %v1479_v0 = vpop.f32.mrb[12].mxu0  ;;  %v1550_v46 = vpop.f32.mrb[12].mxu1 }
 0x15b   :  { %v1480_v45 = vadd.f32 %v1479_v0, %v411_v36  ;;  %v1481_v32 = vpop.f32.mrb[13].mxu0  ;;  %v1551_v47 = vadd.f32 %v1550_v46, %v419_v39  ;;  %v1552_v49 = vpop.f32.mrb[13].mxu1  ;;  %v463_v36 = vrot.slane %v302_v12, %v3147_v61 }
 0x15c   :  { %v1482_v48 = vadd.f32 %v1481_v32, %v415_v42  ;;  %v1553_v50 = vadd.f32 %v1552_v49, %v423_v43 }
 0x15e   :  { %v2486_v51 = vcombine.low %v1480_v45, %v1482_v48  ;;  %v2487_v52 = vcombine.low %v1551_v47, %v1553_v50  ;;  %v303_v50 = vld [vmem:[#allocation7 + $0x28] sm:$0xff] }
 0x15f   :  { %v503_v12 = vrot.slane %v303_v50, %v3150_v63 }
 0x160   :  { %v2494_v53 = vrot.slane %v2486_v51, %v3141_v54  ;;  %v2501_v55 = vrot.slane %v2487_v52, %v3141_v54 }
 0x162   :  { %v2502_v57 = vcombine.low %v2494_v53, %v2501_v55  ;;  %v475_v53 = vrot.slane %v303_v50, %v3129_v38 }
 0x164   :  { %2614 = vst [vmem:[#allocation8 + $0x30] sm:$0xff] %v2502_v57  ;;  %v479_v57 = vrot.slane %v303_v50, %v3133_v41 }
 0x165   :  { %v1621_v2 = vpop.f32.mrb[14].mxu0  ;;  %v1692_v4 = vpop.f32.mrb[14].mxu1 }
 0x166   :  { %v1622_v3 = vadd.f32 %v1621_v2, %v427_v56  ;;  %v1623_v5 = vpop.f32.mrb[15].mxu0  ;;  %v1693_v6 = vadd.f32 %v1692_v4, %v435_v59  ;;  %v1694_v8 = vpop.f32.mrb[15].mxu1  ;;  %v483_v56 = vrot.slane %v303_v50, %v3131_v40  ;;  %v487_v59 = vrot.slane %v303_v50, %v3135_v44 }
 0x167   :  { %v1624_v7 = vadd.f32 %v1623_v5, %v431_v62  ;;  %v1695_v9 = vadd.f32 %v1694_v8, %v439_v1  ;;  %v491_v40 = vrot.slane %v303_v50, %v3143_v58  ;;  %v499_v44 = vrot.slane %v303_v50, %v3145_v60 }
 0x169   :  { %v2503_v10 = vcombine.low %v1622_v3, %v1624_v7  ;;  %v2504_v11 = vcombine.low %v1693_v6, %v1695_v9 }
 0x16b   :  { %v2511_v13 = vrot.slane %v2503_v10, %v3141_v54  ;;  %v2518_v14 = vrot.slane %v2504_v11, %v3141_v54  ;;  %v495_v11 = vrot.slane %v303_v50, %v3147_v61 }
 0x16d   :  { %v2519_v16 = vcombine.low %v2511_v13, %v2518_v14 }
 0x16f   :  { %2615 = vst [vmem:[#allocation8 + $0x38] sm:$0xff] %v2519_v16 }
 0x170   :  { %v1763_v20 = vpop.f32.mrb[16].mxu0  ;;  %v1834_v22 = vpop.f32.mrb[16].mxu1 }
 0x171   :  { %v1764_v21 = vadd.f32 %v1763_v20, %v443_v15  ;;  %v1765_v23 = vpop.f32.mrb[17].mxu0  ;;  %v1835_v24 = vadd.f32 %v1834_v22, %v451_v17  ;;  %v1836_v26 = vpop.f32.mrb[17].mxu1 }
 0x172   :  { %v1766_v25 = vadd.f32 %v1765_v23, %v447_v18  ;;  %v1837_v27 = vadd.f32 %v1836_v26, %v455_v19 }
 0x174   :  { %v2520_v28 = vcombine.low %v1764_v21, %v1766_v25  ;;  %v2521_v29 = vcombine.low %v1835_v24, %v1837_v27  ;;  %v2638_v24 = vld [vmem:[#allocation7 + $0x30] ss:$0 sm:$0xff] }
 0x176   :  { %v2528_v30 = vrot.slane %v2520_v28, %v3141_v54  ;;  %v2535_v31 = vrot.slane %v2521_v29, %v3141_v54 }
 0x178   :  { %v2536_v34 = vcombine.low %v2528_v30, %v2535_v31 }
 0x17a   :  { %2616 = vst [vmem:[#allocation8 + $0x40] sm:$0xff] %v2536_v34 }
 0x17b   :  { %v1905_v39 = vpop.f32.mrb[18].mxu0  ;;  %v1976_v43 = vpop.f32.mrb[18].mxu1 }
 0x17c   :  { %v1906_v42 = vadd.f32 %v1905_v39, %v459_v33  ;;  %v1907_v0 = vpop.f32.mrb[19].mxu0  ;;  %v1977_v45 = vadd.f32 %v1976_v43, %v467_v35  ;;  %v1978_v32 = vpop.f32.mrb[19].mxu1 }
 0x17d   :  { %v1908_v46 = vadd.f32 %v1907_v0, %v463_v36  ;;  %v1979_v47 = vadd.f32 %v1978_v32, %v471_v37 }
 0x17f   :  { %v2537_v48 = vcombine.low %v1906_v42, %v1908_v46  ;;  %v2538_v49 = vcombine.low %v1977_v45, %v1979_v47 }
 0x181   :  { %v2545_v51 = vrot.slane %v2537_v48, %v3141_v54  ;;  %v2552_v52 = vrot.slane %v2538_v49, %v3141_v54 }
 0x183   :  { %v2553_v55 = vcombine.low %v2545_v51, %v2552_v52 }
 0x185   :  { %2617 = vst [vmem:[#allocation8 + $0x48] sm:$0xff] %v2553_v55 }
 0x186   :  { %v2047_v62 = vpop.f32.mrb[20].mxu0  ;;  %v2118_v2 = vpop.f32.mrb[20].mxu1 }
 0x187   :  { %v2048_v1 = vadd.f32 %v2047_v62, %v475_v53  ;;  %v2049_v3 = vpop.f32.mrb[21].mxu0  ;;  %v2119_v4 = vadd.f32 %v2118_v2, %v483_v56  ;;  %v2120_v6 = vpop.f32.mrb[21].mxu1 }
 0x188   :  { %v2050_v5 = vadd.f32 %v2049_v3, %v479_v57  ;;  %v2121_v7 = vadd.f32 %v2120_v6, %v487_v59 }
 0x18a   :  { %v2554_v8 = vcombine.low %v2048_v1, %v2050_v5  ;;  %v2555_v9 = vcombine.low %v2119_v4, %v2121_v7 }
 0x18c   :  { %v2562_v38 = vrot.slane %v2554_v8, %v3141_v54  ;;  %v2569_v10 = vrot.slane %v2555_v9, %v3141_v54 }
 0x18e   :  { %v2570_v41 = vcombine.low %v2562_v38, %v2569_v10 }
 0x190   :  { %2618 = vst [vmem:[#allocation8 + $0x50] sm:$0xff] %v2570_v41 }
 0x191   :  { %v2189_v13 = vpop.f32.mrb[22].mxu0  ;;  %v2260_v15 = vpop.f32.mrb[22].mxu1 }
 0x192   :  { %v2190_v14 = vadd.f32 %v2189_v13, %v491_v40  ;;  %v2191_v16 = vpop.f32.mrb[23].mxu0  ;;  %v2261_v17 = vadd.f32 %v2260_v15, %v499_v44  ;;  %v2262_v19 = vpop.f32.mrb[23].mxu1 }
 0x193   :  { %v2192_v18 = vadd.f32 %v2191_v16, %v495_v11  ;;  %v2263_v20 = vadd.f32 %v2262_v19, %v503_v12 }
 0x195   :  { %v2571_v21 = vcombine.low %v2190_v14, %v2192_v18  ;;  %v2572_v22 = vcombine.low %v2261_v17, %v2263_v20 }
 0x197   :  { %v2579_v58 = vrot.slane %v2571_v21, %v3141_v54  ;;  %v2586_v23 = vrot.slane %v2572_v22, %v3141_v54 }
 0x199   :  { %v2587_v60 = vcombine.low %v2579_v58, %v2586_v23 }
 0x19b   :  { %2619 = vst [vmem:[#allocation8 + $0x58] sm:$0xff] %v2587_v60 }
 0x19c   :  { %v2331_v61 = vpop.f32.mrb[24].mxu0 }
 0x19d   :  { %v2332_v63 = vadd.f32 %v2638_v24, %v2331_v61  ;;  %v2682_v25 = vpop.f32.mrb[25].mxu0 }
 0x19f   :  { %v2594_v26 = vrot.slane %v2332_v63, %v3141_v54 }
 0x1a1   :  { %2621 = vst.msk [vmem:[#allocation8 + $0x60] sm:$0x3] %vm2620_vm2, %v2594_v26 }
 0x1a2   :  { %2968 = shalt.err (!%p2965_p0)
}
 0x1a3   :  { %s2969_s26 = scalar_lea.hbm %s3235_s3, 1568 }
 0x1a4   :  { %p2970_p1 = scmp.ne.s32.totalorder %s3235_s3, %s2969_s26  ;;  %p2973_p2 = scmp.lt.u32.totalorder %s2969_s26, %s3235_s3 }
 0x1a6   :  { %p2975_p3 = pnand %p2973_p2, %p2970_p1 }
 0x1a8   :  { %2978 = shalt.err (!%p2975_p3)
}
 0x1a9   :  { %2631 = dma.vmem_to_hbm [thread:$0]  %s2629_s22, 1568, %s3235_s3, [#allocation4]  }
 0x1aa   :  { %2983 = dma.done.wait [#allocation4], 1568  }
 0x1ab   :  { %2984 = vsyncadd [#allocation4], 4294965728 }
 0x1ac   :  { %2635 = vsyncpa [#allocation3], 1 }
 0x1ad   :  { %2636 = vsyncpa [#allocation6], 1 }
 0x1ae   :  { %2637 = vsyncpa [#allocation4], 1 }

</bundles_post_ra>
